<compile_context>
chip_gen: v7x
topology: tpu7x:2x2x1
jax: 0.10.0
libtpu: 0.0.40
codegen_flags: <defaults>
</compile_context>

<pallas_src>
import functools

import jax
import jax.numpy as jnp
from jax import lax
from jax.experimental import pallas as pl
from jax.experimental.pallas import tpu as pltpu


def densenet_layer_kernel(x_ref, scale_ref, shift_ref, w_ref, b_ref, o_ref,
                          *, H, W, Cin, Cout, nb):
    HW = H * W

    scale = scale_ref[...]          # (Cin, 1)  f32
    shift = shift_ref[...]          # (Cin, 1)  f32
    bias = b_ref[...]               # (Cout, 1) f32

    # Flattened pixel index p = h*W + w, built once per grid step as a single
    # lane-dense (1, HW) iota (no 3-D iotas, no per-channel replication).
    idx = lax.broadcasted_iota(jnp.int32, (1, HW), 1)
    if W & (W - 1) == 0:
        col = idx & (W - 1)         # w = p % W  (power-of-two fast path, no int div)
    else:
        col = idx % W               # general W
    # Per-tap validity (the conv's zero padding), expressed directly on p / w:
    #   dh=0 needs h-1 >= 0  <=>  p >= W ; dh=2 needs h+1 <= H-1  <=>  p < (H-1)*W
    #   dw=0 needs w-1 >= 0  <=>  w >= 1 ; dw=2 needs w+1 <= W-1  <=>  w <= W-2
    row_ok = (idx >= W, None, idx < (H - 1) * W)
    col_ok = (col >= 1, None, col <= W - 2)

    for img in range(nb):           # static, small unrolled loop
        x = x_ref[img]              # (Cin, HW) f32, channel-major, lane-dense
        # BatchNorm (inference affine) + ReLU in f32.
        a = jnp.maximum(x * scale + shift, 0.0)

        acc = jnp.zeros((Cout, HW), jnp.float32)
        for dh in range(3):
            for dw in range(3):
                s = (dh - 1) * W + (dw - 1)          # flattened tap offset
                # Circular lane roll so shifted[p] = a[p + s]; out-of-image reads
                # are exactly the masked positions, so the wraparound is harmless.
                t = a if s == 0 else pltpu.roll(a, shift=(-s) % HW, axis=1)
                m_r, m_c = row_ok[dh], col_ok[dw]
                mask = m_r if m_c is None else (m_c if m_r is None else m_r & m_c)
                if mask is not None:
                    t = jnp.where(mask, t, 0.0)      # zero-padding halo of the conv
                # One small MXU push per tap (vex slot; MXU is far from the
                # bottleneck).  bf16 operands, f32 accumulation.
                acc = acc + lax.dot_general(
                    w_ref[3 * dh + dw], t.astype(jnp.bfloat16),
                    dimension_numbers=(((1,), (0,)), ((), ())),
                    preferred_element_type=jnp.float32)

        # Lane-dense unmasked store: (Cout, HW) with HW a multiple of 128.
        o_ref[img] = (acc + bias).astype(o_ref.dtype)


def _choose_images_per_step(N, per_image_bytes, budget_bytes=4 << 20):
    """Largest divisor of N under the per-step byte budget, keeping >=2 grid steps
    (so dimension_semantics=("parallel",) can use both TensorCores on v7x)."""
    best = 1
    for nb in range(1, N + 1):
        if N % nb != 0:
            continue
        if nb * per_image_bytes > budget_bytes:
            break
        if N >= 2 and N // nb < 2:
            break
        best = nb
    return best


def densenet_layer(x_nchw, scale, shift, w_oihw, bias, *, images_per_step=None):
    N, Cin, H, W = x_nchw.shape
    Cout = w_oihw.shape[0]
    HW = H * W

    # Channel-major kernel view: (N, Cin, H*W) is a free bitcast reshape of NCHW --
    # no wrapper pad, no wrapper transpose, no extra HBM copy of the input.
    x_flat = x_nchw.reshape(N, Cin, HW).astype(jnp.float32)

    # Conv weights OIHW -> (9, Cout, Cin), tap-major (dh, dw); bf16 for the MXU.
    w_taps = jnp.transpose(w_oihw, (2, 3, 0, 1)).reshape(9, Cout, Cin)
    w_taps = w_taps.astype(jnp.bfloat16)

    scale2 = scale.reshape(Cin, 1).astype(jnp.float32)
    shift2 = shift.reshape(Cin, 1).astype(jnp.float32)
    b2 = bias.reshape(Cout, 1).astype(jnp.float32)

    per_image_bytes = (Cin + Cout) * HW * 4          # input block + output block
    nb = images_per_step or _choose_images_per_step(N, per_image_bytes)
    assert N % nb == 0

    kernel = functools.partial(densenet_layer_kernel,
                               H=H, W=W, Cin=Cin, Cout=Cout, nb=nb)

    y_flat = pl.pallas_call(
        kernel,
        out_shape=jax.ShapeDtypeStruct((N, Cout, HW), jnp.float32),
        grid_spec=pltpu.PrefetchScalarGridSpec(
            num_scalar_prefetch=0,
            grid=(N // nb,),
            in_specs=[
                pl.BlockSpec((nb, Cin, HW), lambda n: (n, 0, 0)),
                pl.BlockSpec((Cin, 1), lambda n: (0, 0)),
                pl.BlockSpec((Cin, 1), lambda n: (0, 0)),
                pl.BlockSpec((9, Cout, Cin), lambda n: (0, 0, 0)),
                pl.BlockSpec((Cout, 1), lambda n: (0, 0)),
            ],
            out_specs=pl.BlockSpec((nb, Cout, HW), lambda n: (n, 0, 0)),
        ),
        compiler_params=pltpu.CompilerParams(
            dimension_semantics=("parallel",),
            # Tiny footprint here; safe on all generations (v7x scoped default).
            # Raise toward ~96 MiB on v5e/v6e if nb / blocks are grown.
            vmem_limit_bytes=32 * 1024 * 1024,
        ),
    )(x_flat, scale2, shift2, w_taps, b2)

    # Conv output back to NCHW (free reshape); DenseNet concat done by XLA.
    y = y_flat.reshape(N, Cout, H, W)
    return jnp.concatenate([y, x_nchw], axis=1)


if __name__ == "__main__":
    N, Cin, H, W = 2, 4, 16, 16
    Cout = 8
    eps = 1e-5

    key = jax.random.PRNGKey(0)
    kx, kg, kb, km, kv, kw, kbias = jax.random.split(key, 7)

    # PyTorch-style NCHW input.
    x = jax.random.normal(kx, (N, Cin, H, W), dtype=jnp.float32)

    # BatchNorm2d parameters / running stats (inference mode), folded to scale/shift.
    gamma = 1.0 + 0.1 * jax.random.normal(kg, (Cin,), dtype=jnp.float32)
    beta = 0.1 * jax.random.normal(kb, (Cin,), dtype=jnp.float32)
    running_mean = 0.1 * jax.random.normal(km, (Cin,), dtype=jnp.float32)
    running_var = jnp.abs(jax.random.normal(kv, (Cin,), dtype=jnp.float32)) + 0.5

    scale = gamma / jnp.sqrt(running_var + eps)
    shift = beta - running_mean * scale

    # Conv2d(Cin, Cout, 3, padding=1) weights, PyTorch OIHW layout.
    w_oihw = 0.1 * jax.random.normal(kw, (Cout, Cin, 3, 3), dtype=jnp.float32)
    bias = 0.1 * jax.random.normal(kbias, (Cout,), dtype=jnp.float32)

    out = densenet_layer(x, scale, shift, w_oihw, bias)
    out = jax.block_until_ready(out)

    # Pure-JAX reference (silent correctness check; bf16 MXU -> loose tolerance).
    a_ref = jnp.maximum(x * scale.reshape(1, Cin, 1, 1)
                        + shift.reshape(1, Cin, 1, 1), 0.0)
    y_ref = lax.conv_general_dilated(
        a_ref, w_oihw, window_strides=(1, 1), padding=((1, 1), (1, 1)),
        dimension_numbers=("NCHW", "OIHW", "NCHW")) + bias.reshape(1, Cout, 1, 1)
    ref = jnp.concatenate([y_ref, x], axis=1)

    assert out.shape == (N, Cout + Cin, H, W)
    assert jnp.allclose(out, ref, atol=5e-2, rtol=5e-2)

    print("KERNEL_OK")
</pallas_src>

<mosaic_0001>
module attributes {stable_mosaic.version = 11 : i64} {
  func.func @densenet_layer_kernel(%arg0: i32, %arg1: memref<1x4x256xf32, #tpu.memory_space<vmem>>, %arg2: memref<4x1xf32, #tpu.memory_space<vmem>>, %arg3: memref<4x1xf32, #tpu.memory_space<vmem>>, %arg4: memref<9x8x4xbf16, #tpu.memory_space<vmem>>, %arg5: memref<8x1xf32, #tpu.memory_space<vmem>>, %arg6: memref<1x8x256xf32, #tpu.memory_space<vmem>>) attributes {dimension_semantics = [#tpu.dimension_semantics<parallel>], iteration_bounds = array<i64: 2>, scalar_prefetch = 0 : i64, scratch_operands = 0 : i64, tpu.core_type = #tpu.core_type<tc>, window_params = [{transform_indices = @transform_0, window_bounds = array<i64: 1, 4, 256>}, {pipeline_mode = #tpu.pipeline_mode<synchronous>, transform_indices = @transform_1, window_bounds = array<i64: 4, 1>}, {pipeline_mode = #tpu.pipeline_mode<synchronous>, transform_indices = @transform_2, window_bounds = array<i64: 4, 1>}, {pipeline_mode = #tpu.pipeline_mode<synchronous>, transform_indices = @transform_3, window_bounds = array<i64: 9, 8, 4>}, {pipeline_mode = #tpu.pipeline_mode<synchronous>, transform_indices = @transform_4, window_bounds = array<i64: 8, 1>}, {transform_indices = @transform_5, window_bounds = array<i64: 1, 8, 256>}]} {
    %c0 = arith.constant 0 : index
    %c0_0 = arith.constant 0 : index
    %0 = vector.load %arg2[%c0, %c0_0] : memref<4x1xf32, #tpu.memory_space<vmem>>, vector<4x1xf32>
    %c0_1 = arith.constant 0 : index
    %c0_2 = arith.constant 0 : index
    %1 = vector.load %arg3[%c0_1, %c0_2] : memref<4x1xf32, #tpu.memory_space<vmem>>, vector<4x1xf32>
    %c0_3 = arith.constant 0 : index
    %c0_4 = arith.constant 0 : index
    %2 = vector.load %arg5[%c0_3, %c0_4] : memref<8x1xf32, #tpu.memory_space<vmem>>, vector<8x1xf32>
    %3 = tpu.iota {dimensions = array<i32: 1>} : vector<1x256xi32>
    %c15_i32 = arith.constant 15 : i32
    %4 = vector.broadcast %c15_i32 : i32 to vector<1x256xi32>
    %5 = arith.andi %3, %4 : vector<1x256xi32>
    %c16_i32 = arith.constant 16 : i32
    %6 = vector.broadcast %c16_i32 : i32 to vector<1x256xi32>
    %7 = arith.cmpi sge, %3, %6 : vector<1x256xi32>
    %c240_i32 = arith.constant 240 : i32
    %8 = vector.broadcast %c240_i32 : i32 to vector<1x256xi32>
    %9 = arith.cmpi slt, %3, %8 : vector<1x256xi32>
    %c1_i32 = arith.constant 1 : i32
    %10 = vector.broadcast %c1_i32 : i32 to vector<1x256xi32>
    %11 = arith.cmpi sge, %5, %10 : vector<1x256xi32>
    %c14_i32 = arith.constant 14 : i32
    %12 = vector.broadcast %c14_i32 : i32 to vector<1x256xi32>
    %13 = arith.cmpi sle, %5, %12 : vector<1x256xi32>
    %c0_5 = arith.constant 0 : index
    %c0_6 = arith.constant 0 : index
    %c0_7 = arith.constant 0 : index
    %14 = vector.load %arg1[%c0_5, %c0_6, %c0_7] : memref<1x4x256xf32, #tpu.memory_space<vmem>>, vector<1x4x256xf32>
    %15 = vector.shape_cast %14 : vector<1x4x256xf32> to vector<4x256xf32>
    %16 = vector.broadcast %0 : vector<4x1xf32> to vector<4x256xf32>
    %17 = arith.mulf %15, %16 : vector<4x256xf32>
    %18 = vector.broadcast %1 : vector<4x1xf32> to vector<4x256xf32>
    %19 = arith.addf %17, %18 : vector<4x256xf32>
    %cst = arith.constant 0.000000e+00 : f32
    %20 = vector.broadcast %cst : f32 to vector<4x256xf32>
    %21 = arith.maximumf %19, %20 : vector<4x256xf32>
    %cst_8 = arith.constant 0.000000e+00 : f32
    %22 = vector.broadcast %cst_8 : f32 to vector<8x256xf32>
    %c17_i32 = arith.constant 17 : i32
    %23 = tpu.dynamic_rotate %21 by %c17_i32 dim 1 : vector<4x256xf32>, i32 -> vector<4x256xf32>
    %24 = arith.andi %7, %11 : vector<1x256xi1>
    %cst_9 = arith.constant 0.000000e+00 : f32
    %25 = vector.shape_cast %24 : vector<1x256xi1> to vector<1x256xi1>
    %26 = vector.broadcast %25 : vector<1x256xi1> to vector<4x256xi1>
    %27 = vector.broadcast %cst_9 : f32 to vector<4x256xf32>
    %28 = arith.select %26, %23, %27 : vector<4x256xi1>, vector<4x256xf32>
    %c0_10 = arith.constant 0 : index
    %c0_11 = arith.constant 0 : index
    %c0_12 = arith.constant 0 : index
    %29 = vector.load %arg4[%c0_10, %c0_11, %c0_12] : memref<9x8x4xbf16, #tpu.memory_space<vmem>>, vector<1x8x4xbf16>
    %30 = vector.shape_cast %29 : vector<1x8x4xbf16> to vector<8x4xbf16>
    %31 = arith.truncf %28 : vector<4x256xf32> to vector<4x256xbf16>
    %cst_13 = arith.constant dense<0.000000e+00> : vector<8x256xf32>
    %32 = tpu.matmul %30, %31, %cst_13 {dimension_numbers = #tpu.dot_dimension_numbers<[1], [0], [0], [1], [0, 0, 1, 1], [], []>} : vector<8x4xbf16>, vector<4x256xbf16>, vector<8x256xf32> -> vector<8x256xf32>
    %33 = arith.addf %22, %32 : vector<8x256xf32>
    %c16_i32_14 = arith.constant 16 : i32
    %34 = tpu.dynamic_rotate %21 by %c16_i32_14 dim 1 : vector<4x256xf32>, i32 -> vector<4x256xf32>
    %cst_15 = arith.constant 0.000000e+00 : f32
    %35 = vector.shape_cast %7 : vector<1x256xi1> to vector<1x256xi1>
    %36 = vector.broadcast %35 : vector<1x256xi1> to vector<4x256xi1>
    %37 = vector.broadcast %cst_15 : f32 to vector<4x256xf32>
    %38 = arith.select %36, %34, %37 : vector<4x256xi1>, vector<4x256xf32>
    %c1 = arith.constant 1 : index
    %c0_16 = arith.constant 0 : index
    %c0_17 = arith.constant 0 : index
    %39 = vector.load %arg4[%c1, %c0_16, %c0_17] : memref<9x8x4xbf16, #tpu.memory_space<vmem>>, vector<1x8x4xbf16>
    %40 = vector.shape_cast %39 : vector<1x8x4xbf16> to vector<8x4xbf16>
    %41 = arith.truncf %38 : vector<4x256xf32> to vector<4x256xbf16>
    %cst_18 = arith.constant dense<0.000000e+00> : vector<8x256xf32>
    %42 = tpu.matmul %40, %41, %cst_18 {dimension_numbers = #tpu.dot_dimension_numbers<[1], [0], [0], [1], [0, 0, 1, 1], [], []>} : vector<8x4xbf16>, vector<4x256xbf16>, vector<8x256xf32> -> vector<8x256xf32>
    %43 = arith.addf %33, %42 : vector<8x256xf32>
    %c15_i32_19 = arith.constant 15 : i32
    %44 = tpu.dynamic_rotate %21 by %c15_i32_19 dim 1 : vector<4x256xf32>, i32 -> vector<4x256xf32>
    %45 = arith.andi %7, %13 : vector<1x256xi1>
    %cst_20 = arith.constant 0.000000e+00 : f32
    %46 = vector.shape_cast %45 : vector<1x256xi1> to vector<1x256xi1>
    %47 = vector.broadcast %46 : vector<1x256xi1> to vector<4x256xi1>
    %48 = vector.broadcast %cst_20 : f32 to vector<4x256xf32>
    %49 = arith.select %47, %44, %48 : vector<4x256xi1>, vector<4x256xf32>
    %c2 = arith.constant 2 : index
    %c0_21 = arith.constant 0 : index
    %c0_22 = arith.constant 0 : index
    %50 = vector.load %arg4[%c2, %c0_21, %c0_22] : memref<9x8x4xbf16, #tpu.memory_space<vmem>>, vector<1x8x4xbf16>
    %51 = vector.shape_cast %50 : vector<1x8x4xbf16> to vector<8x4xbf16>
    %52 = arith.truncf %49 : vector<4x256xf32> to vector<4x256xbf16>
    %cst_23 = arith.constant dense<0.000000e+00> : vector<8x256xf32>
    %53 = tpu.matmul %51, %52, %cst_23 {dimension_numbers = #tpu.dot_dimension_numbers<[1], [0], [0], [1], [0, 0, 1, 1], [], []>} : vector<8x4xbf16>, vector<4x256xbf16>, vector<8x256xf32> -> vector<8x256xf32>
    %54 = arith.addf %43, %53 : vector<8x256xf32>
    %c1_i32_24 = arith.constant 1 : i32
    %55 = tpu.dynamic_rotate %21 by %c1_i32_24 dim 1 : vector<4x256xf32>, i32 -> vector<4x256xf32>
    %cst_25 = arith.constant 0.000000e+00 : f32
    %56 = vector.shape_cast %11 : vector<1x256xi1> to vector<1x256xi1>
    %57 = vector.broadcast %56 : vector<1x256xi1> to vector<4x256xi1>
    %58 = vector.broadcast %cst_25 : f32 to vector<4x256xf32>
    %59 = arith.select %57, %55, %58 : vector<4x256xi1>, vector<4x256xf32>
    %c3 = arith.constant 3 : index
    %c0_26 = arith.constant 0 : index
    %c0_27 = arith.constant 0 : index
    %60 = vector.load %arg4[%c3, %c0_26, %c0_27] : memref<9x8x4xbf16, #tpu.memory_space<vmem>>, vector<1x8x4xbf16>
    %61 = vector.shape_cast %60 : vector<1x8x4xbf16> to vector<8x4xbf16>
    %62 = arith.truncf %59 : vector<4x256xf32> to vector<4x256xbf16>
    %cst_28 = arith.constant dense<0.000000e+00> : vector<8x256xf32>
    %63 = tpu.matmul %61, %62, %cst_28 {dimension_numbers = #tpu.dot_dimension_numbers<[1], [0], [0], [1], [0, 0, 1, 1], [], []>} : vector<8x4xbf16>, vector<4x256xbf16>, vector<8x256xf32> -> vector<8x256xf32>
    %64 = arith.addf %54, %63 : vector<8x256xf32>
    %c4 = arith.constant 4 : index
    %c0_29 = arith.constant 0 : index
    %c0_30 = arith.constant 0 : index
    %65 = vector.load %arg4[%c4, %c0_29, %c0_30] : memref<9x8x4xbf16, #tpu.memory_space<vmem>>, vector<1x8x4xbf16>
    %66 = vector.shape_cast %65 : vector<1x8x4xbf16> to vector<8x4xbf16>
    %67 = arith.truncf %21 : vector<4x256xf32> to vector<4x256xbf16>
    %cst_31 = arith.constant dense<0.000000e+00> : vector<8x256xf32>
    %68 = tpu.matmul %66, %67, %cst_31 {dimension_numbers = #tpu.dot_dimension_numbers<[1], [0], [0], [1], [0, 0, 1, 1], [], []>} : vector<8x4xbf16>, vector<4x256xbf16>, vector<8x256xf32> -> vector<8x256xf32>
    %69 = arith.addf %64, %68 : vector<8x256xf32>
    %c255_i32 = arith.constant 255 : i32
    %70 = tpu.dynamic_rotate %21 by %c255_i32 dim 1 : vector<4x256xf32>, i32 -> vector<4x256xf32>
    %cst_32 = arith.constant 0.000000e+00 : f32
    %71 = vector.shape_cast %13 : vector<1x256xi1> to vector<1x256xi1>
    %72 = vector.broadcast %71 : vector<1x256xi1> to vector<4x256xi1>
    %73 = vector.broadcast %cst_32 : f32 to vector<4x256xf32>
    %74 = arith.select %72, %70, %73 : vector<4x256xi1>, vector<4x256xf32>
    %c5 = arith.constant 5 : index
    %c0_33 = arith.constant 0 : index
    %c0_34 = arith.constant 0 : index
    %75 = vector.load %arg4[%c5, %c0_33, %c0_34] : memref<9x8x4xbf16, #tpu.memory_space<vmem>>, vector<1x8x4xbf16>
    %76 = vector.shape_cast %75 : vector<1x8x4xbf16> to vector<8x4xbf16>
    %77 = arith.truncf %74 : vector<4x256xf32> to vector<4x256xbf16>
    %cst_35 = arith.constant dense<0.000000e+00> : vector<8x256xf32>
    %78 = tpu.matmul %76, %77, %cst_35 {dimension_numbers = #tpu.dot_dimension_numbers<[1], [0], [0], [1], [0, 0, 1, 1], [], []>} : vector<8x4xbf16>, vector<4x256xbf16>, vector<8x256xf32> -> vector<8x256xf32>
    %79 = arith.addf %69, %78 : vector<8x256xf32>
    %c241_i32 = arith.constant 241 : i32
    %80 = tpu.dynamic_rotate %21 by %c241_i32 dim 1 : vector<4x256xf32>, i32 -> vector<4x256xf32>
    %81 = arith.andi %9, %11 : vector<1x256xi1>
    %cst_36 = arith.constant 0.000000e+00 : f32
    %82 = vector.shape_cast %81 : vector<1x256xi1> to vector<1x256xi1>
    %83 = vector.broadcast %82 : vector<1x256xi1> to vector<4x256xi1>
    %84 = vector.broadcast %cst_36 : f32 to vector<4x256xf32>
    %85 = arith.select %83, %80, %84 : vector<4x256xi1>, vector<4x256xf32>
    %c6 = arith.constant 6 : index
    %c0_37 = arith.constant 0 : index
    %c0_38 = arith.constant 0 : index
    %86 = vector.load %arg4[%c6, %c0_37, %c0_38] : memref<9x8x4xbf16, #tpu.memory_space<vmem>>, vector<1x8x4xbf16>
    %87 = vector.shape_cast %86 : vector<1x8x4xbf16> to vector<8x4xbf16>
    %88 = arith.truncf %85 : vector<4x256xf32> to vector<4x256xbf16>
    %cst_39 = arith.constant dense<0.000000e+00> : vector<8x256xf32>
    %89 = tpu.matmul %87, %88, %cst_39 {dimension_numbers = #tpu.dot_dimension_numbers<[1], [0], [0], [1], [0, 0, 1, 1], [], []>} : vector<8x4xbf16>, vector<4x256xbf16>, vector<8x256xf32> -> vector<8x256xf32>
    %90 = arith.addf %79, %89 : vector<8x256xf32>
    %c240_i32_40 = arith.constant 240 : i32
    %91 = tpu.dynamic_rotate %21 by %c240_i32_40 dim 1 : vector<4x256xf32>, i32 -> vector<4x256xf32>
    %cst_41 = arith.constant 0.000000e+00 : f32
    %92 = vector.shape_cast %9 : vector<1x256xi1> to vector<1x256xi1>
    %93 = vector.broadcast %92 : vector<1x256xi1> to vector<4x256xi1>
    %94 = vector.broadcast %cst_41 : f32 to vector<4x256xf32>
    %95 = arith.select %93, %91, %94 : vector<4x256xi1>, vector<4x256xf32>
    %c7 = arith.constant 7 : index
    %c0_42 = arith.constant 0 : index
    %c0_43 = arith.constant 0 : index
    %96 = vector.load %arg4[%c7, %c0_42, %c0_43] : memref<9x8x4xbf16, #tpu.memory_space<vmem>>, vector<1x8x4xbf16>
    %97 = vector.shape_cast %96 : vector<1x8x4xbf16> to vector<8x4xbf16>
    %98 = arith.truncf %95 : vector<4x256xf32> to vector<4x256xbf16>
    %cst_44 = arith.constant dense<0.000000e+00> : vector<8x256xf32>
    %99 = tpu.matmul %97, %98, %cst_44 {dimension_numbers = #tpu.dot_dimension_numbers<[1], [0], [0], [1], [0, 0, 1, 1], [], []>} : vector<8x4xbf16>, vector<4x256xbf16>, vector<8x256xf32> -> vector<8x256xf32>
    %100 = arith.addf %90, %99 : vector<8x256xf32>
    %c239_i32 = arith.constant 239 : i32
    %101 = tpu.dynamic_rotate %21 by %c239_i32 dim 1 : vector<4x256xf32>, i32 -> vector<4x256xf32>
    %102 = arith.andi %9, %13 : vector<1x256xi1>
    %cst_45 = arith.constant 0.000000e+00 : f32
    %103 = vector.shape_cast %102 : vector<1x256xi1> to vector<1x256xi1>
    %104 = vector.broadcast %103 : vector<1x256xi1> to vector<4x256xi1>
    %105 = vector.broadcast %cst_45 : f32 to vector<4x256xf32>
    %106 = arith.select %104, %101, %105 : vector<4x256xi1>, vector<4x256xf32>
    %c8 = arith.constant 8 : index
    %c0_46 = arith.constant 0 : index
    %c0_47 = arith.constant 0 : index
    %107 = vector.load %arg4[%c8, %c0_46, %c0_47] : memref<9x8x4xbf16, #tpu.memory_space<vmem>>, vector<1x8x4xbf16>
    %108 = vector.shape_cast %107 : vector<1x8x4xbf16> to vector<8x4xbf16>
    %109 = arith.truncf %106 : vector<4x256xf32> to vector<4x256xbf16>
    %cst_48 = arith.constant dense<0.000000e+00> : vector<8x256xf32>
    %110 = tpu.matmul %108, %109, %cst_48 {dimension_numbers = #tpu.dot_dimension_numbers<[1], [0], [0], [1], [0, 0, 1, 1], [], []>} : vector<8x4xbf16>, vector<4x256xbf16>, vector<8x256xf32> -> vector<8x256xf32>
    %111 = arith.addf %100, %110 : vector<8x256xf32>
    %112 = vector.broadcast %2 : vector<8x1xf32> to vector<8x256xf32>
    %113 = arith.addf %111, %112 : vector<8x256xf32>
    %c0_49 = arith.constant 0 : index
    %c0_50 = arith.constant 0 : index
    %c0_51 = arith.constant 0 : index
    %114 = vector.load %arg6[%c0_49, %c0_50, %c0_51] : memref<1x8x256xf32, #tpu.memory_space<vmem>>, vector<1x8x256xf32>
    %115 = vector.shape_cast %114 : vector<1x8x256xf32> to vector<8x256xf32>
    %116 = vector.shape_cast %113 : vector<8x256xf32> to vector<1x8x256xf32>
    tpu.vector_store %arg6[%c0_49, %c0_50, %c0_51], %116 {strides = array<i32>} : memref<1x8x256xf32, #tpu.memory_space<vmem>>, vector<1x8x256xf32>,
    return
  }
  func.func @transform_0(%arg0: i32) -> (i32, i32, i32) {
    %c0_i32 = arith.constant 0 : i32
    %c0_i32_0 = arith.constant 0 : i32
    %c0_i32_1 = arith.constant 0 : i32
    return %arg0, %c0_i32, %c0_i32_0 : i32, i32, i32
  }
  func.func @transform_1(%arg0: i32) -> (i32, i32) {
    %c0_i32 = arith.constant 0 : i32
    %c0_i32_0 = arith.constant 0 : i32
    %c0_i32_1 = arith.constant 0 : i32
    return %c0_i32, %c0_i32_0 : i32, i32
  }
  func.func @transform_2(%arg0: i32) -> (i32, i32) {
    %c0_i32 = arith.constant 0 : i32
    %c0_i32_0 = arith.constant 0 : i32
    %c0_i32_1 = arith.constant 0 : i32
    return %c0_i32, %c0_i32_0 : i32, i32
  }
  func.func @transform_3(%arg0: i32) -> (i32, i32, i32) {
    %c0_i32 = arith.constant 0 : i32
    %c0_i32_0 = arith.constant 0 : i32
    %c0_i32_1 = arith.constant 0 : i32
    %c0_i32_2 = arith.constant 0 : i32
    return %c0_i32, %c0_i32_0, %c0_i32_1 : i32, i32, i32
  }
  func.func @transform_4(%arg0: i32) -> (i32, i32) {
    %c0_i32 = arith.constant 0 : i32
    %c0_i32_0 = arith.constant 0 : i32
    %c0_i32_1 = arith.constant 0 : i32
    return %c0_i32, %c0_i32_0 : i32, i32
  }
  func.func @transform_5(%arg0: i32) -> (i32, i32, i32) {
    %c0_i32 = arith.constant 0 : i32
    %c0_i32_0 = arith.constant 0 : i32
    %c0_i32_1 = arith.constant 0 : i32
    return %arg0, %c0_i32, %c0_i32_0 : i32, i32, i32
  }
}

</mosaic_0001>

<bundles_post_ra>
// kernel: tpu_custom_call.1
= control target key start
LH: loop header
LB: loop body
LE: loop exit
PB: predicated region body
PF: predicated region fallthrough
CT: control target
= control target key end

     0   :  { %10 = vsyncpa [#allocation3], 0  ;;  %s1484_s0 = inlined_call_operand.vmem [shape: f32[2,4,256], index: 0, kind: input, shape index: {}]   ;;  %s1485_s1 = inlined_call_operand.vmem [shape: f32[4,1], index: 1, kind: input, shape index: {}]   ;;  %s1486_s2 = inlined_call_operand.vmem [shape: f32[4,1], index: 2, kind: input, shape index: {}]   ;;  %s1487_s3 = inlined_call_operand.vmem [shape: bf16[9,8,4], index: 3, kind: input, shape index: {}]   ;;  %s1488_s4 = inlined_call_operand.vmem [shape: f32[8,1], index: 4, kind: input, shape index: {}]   ;;  %s1489_s5 = inlined_call_operand.hbm [shape: f32[2,8,256], index: 5, kind: output, shape index: {}]  }
   0x1   :  { %12 = vsyncpa [#allocation3 + $0x1], 0  ;;  %s1202_s18 = smov 0   ;;  %s1204_s19 = smov 0  }
   0x2   :  { %s1206_s20 = smov 0   ;;  %s1208_s21 = smov 0  }
   0x3 LB: > { %s1223_s22 = sadd.s32 4294967295, %s1159_s21   ;;  %s967_s23 = sadd.s32 4294967294, %s1159_s21   ;;  %s1159_s21 = sphi %s1208_s21, %s1503_s21   ;;  %s1155_s20 = sphi %s1206_s20, %s1502_s20   ;;  %s1151_s19 = sphi %s1204_s19, %s1501_s19   ;;  %s1147_s18 = sphi %s1202_s18, %s1500_s18  }
   0x4   : > { %s1227_s24 = sadd.s32 1, %s1159_s21   ;;  %s135_s25 = sadd.s32 1, %s1155_s20 }
   0x5   : > { %s132_s26 = ssub.s32 %s1159_s21, %s1227_s24  ;;  %p145_p0 = scmp.ne.s32.totalorder %s1155_s20, %s1151_s19 }
   0x6   : > { %p133_p1 = scmp.eq.s32.totalorder %s132_s26, 0  ;;  %p146_p2 = scmp.eq.s32.totalorder %s1223_s22, 1 }
   0x7   : > { %p151_p3 = scmp.ne.s32.totalorder %s1151_s19, %s1147_s18  ;;  %p152_p4 = scmp.eq.s32.totalorder %s967_s23, 1 }
   0x8   : > { %s1238_s27 = scalar_select %p133_p1, %s1155_s20, %s135_s25  }
   0x9   : > { %p1240_p5 = por %p146_p2, %p145_p0  ;;  %p1244_p6 = por %p152_p4, %p151_p3 }
   0xa   : > { %p970_p7 = scmp.ge.s32.totalorder %s1159_s21, 1  ;;  %p190_p8 = scmp.lt.s32.totalorder %s1159_s21, 3 }
   0xc   : > { %p191_p9 = pnand %p970_p7, %p190_p8 }
   0xd   : > { %v224_v0 = vld [vmem:[%s1485_s1] sm:$0xf] (!%p191_p9)  ;;  %v1161_v1 = vmov (!%p191_p9), 0   ;;  %p218_p10 = scmp.lt.s32.totalorder (!%p191_p9), %s1223_s22, 1  ;;  %v227_v3 = vlaneseq (!%p191_p9)  ;;  %v1162_v4 = vmov (!%p191_p9), 839922192  }
   0xe   : > { %194 = sbr.rel (%p191_p9) target bundleno = 546 (0x222), region = 40  ;;  %1056 = vset.pattern.permute.xlu0 (!%p191_p9), %v1161_v1  ;;  %349 = vmatprep.mubr.bf16.mxu0 (!%p191_p9), %v1161_v1  ;;  %v225_v2 = vld [vmem:[%s1486_s2] sm:$0xf] (!%p191_p9)  ;;  %v246_v5 = vunpack.c.l.s4 (!%p191_p9), %v1162_v4  ;;  %s1163_s14 = smov (!%p191_p9), 15   ;;  %vm310_vm5 = vcmask (!%p191_p9), 1041408   ;;  %vm306_vm14 = vcmask (!%p191_p9), 31744  }
   0xf   : > { %243 = vperm.xlu0 (!%p191_p9), %1056, %v224_v0   ;;  %399 = vmatprep.mubr.bf16.mxu1 (!%p191_p9), %v1161_v1  ;;  %v249_v7 = vshrl.u32 (!%p191_p9), %v227_v3, 7  ;;  %s1164_s15 = smov (!%p191_p9), 16   ;;  %s1165_s16 = smov (!%p191_p9), 127   ;;  %v226_v19 = vld [vmem:[%s1488_s4] sm:$0xff] (!%p191_p9)  ;;  %v1275_v20 = vand.u32 (!%p191_p9), 127, %v227_v3 }
  0x10   : > { %v247_v6 = vunpack.c.0.s8 (!%p191_p9), %v246_v5  ;;  %s1166_s17 = smov (!%p191_p9), 17   ;;  %s1167_s23 = smov (!%p191_p9), 112   ;;  %v974_v61 = vld [vmem:[%s1487_s3 + $0x4] sm:$0xf] (!%p191_p9)  ;;  %v985_v25 = vld [vmem:[%s1487_s3 + $0x10] sm:$0xf] (!%p191_p9) }
  0x11   : > { %s1168_s25 = smov (!%p191_p9), 1   ;;  %s1169_s6 = smov (!%p191_p9), 113   ;;  %v1278_v21 = vadd.s32 (!%p191_p9), 128, %v1275_v20  ;;  %v230_v22 = vand.u32 (!%p191_p9), 15, %v1275_v20  ;;  %vm232_vm0 = vcmp.ge.s32.totalorder (!%p191_p9), %v1275_v20, 16  ;;  %vm412_vm3 = vcmp.lt.s32.totalorder (!%p191_p9), %v1275_v20, 15 }
  0x12   : > { %v250_v8 = vsub.s32 (!%p191_p9), %v247_v6, %v249_v7  ;;  %s1170_s7 = smov (!%p191_p9), 111   ;;  %vm293_vm4 = vcmp.lt.s32.totalorder (!%p191_p9), %v1275_v20, 16  ;;  %vm608_vm7 = vcmp.lt.s32.totalorder (!%p191_p9), %v1275_v20, 127  ;;  %vm275_vm9 = vcmp.lt.s32.totalorder (!%p191_p9), %v1275_v20, 17  ;;  %v994_v24 = vld [vmem:[%s1487_s3 + $0x1c] sm:$0xf] (!%p191_p9) }
  0x13   : > { %256 = vperm.xlu0 (!%p191_p9), %1056, %v225_v2   ;;  %v231_v23 = vand.u32 (!%p191_p9), 15, %v1278_v21  ;;  %vm1283_vm1 = vcmp.le.s32.totalorder (!%p191_p9), %v230_v22, 14  ;;  %vm1303_vm10 = vcmp.ge.s32.totalorder (!%p191_p9), %v230_v22, 1  ;;  %vm235_vm12 = vcmp.lt.s32.totalorder (!%p191_p9), %v1278_v21, 240  ;;  %s1006_s12 = sshll.u32 (!%p191_p9), %s1223_s22, 8 }
  0x14   : > { %vm415_vm6 = vmand (!%p191_p9), %vm232_vm0, %vm1283_vm1  ;;  %vm483_vm13 = vcmp.lt.s32.totalorder (!%p191_p9), %v1275_v20, 1  ;;  %vm677_vm15 = vcmp.lt.s32.totalorder (!%p191_p9), %v1275_v20, 113 }
  0x15   : > { %s219_s9 = scalar_select %p218_p10, %s1223_s22, 1  ;;  %vm1287_vm2 = vcmp.le.s32.totalorder %v231_v23, 14  ;;  %vm1298_vm8 = vcmp.ge.s32.totalorder %v231_v23, 1  ;;  %vm278_vm11 = vmand %vm232_vm0, %vm1303_vm10 }
  0x17   : > { %s1005_s10 = sshll.u32 %s219_s9, 3 }
  0x18   : > { %s222_s13 = scalar_lea.vmem %s1484_s0, %s1005_s10  ;;  %s215_s10 = sand.u32 1, %s1151_s19  }
  0x19   : > { %v240_v11 = vld [vmem:[%s222_s13] sm:$0xff]  ;;  %s971_s11 = sshll.u32 %s215_s10, 4  ;;  %s894_s22 = scalar_lea.sflag [#allocation3], %s215_s10 }
  0x1a   : > { %s217_s13 = scalar_lea.vmem [#allocation2], %s971_s11 }
  0x8e   : > { %v244_v9 = vpop.permute.xlu0 %243 }
  0x8f   : > { %v251_v10 = vrot.slane %v244_v9, %v250_v8 }
  0x91   : > { %v253_v13 = vmul.f32 %v251_v10, %v240_v11 }
  0x92   : > { %v257_v12 = vpop.permute.xlu0 %256 }
  0x93   : > { %v264_v14 = vrot.slane %v257_v12, %v250_v8 }
  0x95   : > { %v266_v15 = vadd.f32 %v264_v14, %v253_v13 }
  0x97   : > { %v1264_v16 = vmax.f32 %v266_v15, 0.0  ;;  %v286_v15 = vld [vmem:[%s1487_s3] sm:$0xf] }
  0x99   : > { %v1268_v17 = vcombine.high %v1264_v16, %v1264_v16 }
  0x9b   : > { %v1067_v18 = vpack.i.bf16 %v1268_v17, %v1264_v16  ;;  %v551_v2 = vpack.c.bf16 %v1268_v17, %v1268_v17 }
  0x9d   : > { %1068 = vrot.lane.b32.xlu0 %v1067_v18, %s1163_s14  ;;  %1058 = vrot.lane.b32.xlu1 %v1067_v18, %s1164_s15  ;;  %s908_s14 = sshll.u32 %s217_s13, 4  ;;  %s1444_s14 = int_to_ptr.vmem [resolvable:$true] %s908_s14 }
  0xa1   : > { %1078 = vrot.lane.b32.xlu0 %v1067_v18, %s1165_s16  ;;  %1063 = vrot.lane.b32.xlu1 %v1067_v18, %s1166_s17  ;;  %s1442_s17 = scalar_lea.hbm %s1489_s5, %s1006_s12 }
  0xa5   : > { %1088 = vrot.lane.b32.xlu0 %v1067_v18, %s1167_s23  ;;  %1073 = vrot.lane.b32.xlu1 %v1067_v18, %s1168_s25  ;;  %s1097_s23 = scalar_lea.vmem %s1444_s14, 256  ;;  %s1171_s25 = smov [#allocation2]  }
  0xa6   : > { %p1098_p11 = scmp.ne.s32.totalorder %s1444_s14, %s1097_s23  ;;  %s1101_s26 = sshll.u32 %s1171_s25, 4  ;;  %s1102_s26 = int_to_ptr.vmem [resolvable:$false] %s1101_s26 }
  0xa7   : > { %s1103_s30 = scalar_lea.vmem %s1102_s26, 512  ;;  %p1104_p0 = scmp.lt.s32.totalorder %s1444_s14, %s1102_s26 }
  0xa8   : > { %p1099_p12 = pnand %p1098_p11, %p1240_p5  ;;  %p1105_p1 = scmp.lt.s32.totalorder %s1103_s30, %s1097_s23 }
  0xa9   : > { %886 = vperm.xlu0 %1056, %v226_v19   ;;  %1083 = vrot.lane.b32.xlu1 %v1067_v18, %s1169_s6 }
  0xaa   : > { %p1100_p13 = pneg %p1099_p12  ;;  %p1106_p2 = por %p1105_p1, %p1104_p0 }
  0xac   : > { %p1107_p3 = pnand %p1106_p2, %p1100_p13 }
  0xad   : > { %1093 = vrot.lane.b32.xlu1 %v1067_v18, %s1170_s7 }
 0x10f   : > { %v1069_v26 = vpop.permute.xlu0 %1068  ;;  %v1059_v27 = vpop.permute.xlu1 %1058 }
 0x110   : > { %v1071_v28 = vunpack.i.h.bf16 %v1069_v26  ;;  %v1070_v29 = vunpack.i.l.bf16 %v1069_v26  ;;  %v1061_v30 = vunpack.i.h.bf16 %v1059_v27  ;;  %v1060_v31 = vunpack.i.l.bf16 %v1059_v27 }
 0x112   : > { %v413_v34 = vsel %vm412_vm3, %v1070_v29, %v1071_v28  ;;  %v414_v35 = vsel %vm412_vm3, %v1071_v28, %v1070_v29  ;;  %v294_v36 = vsel %vm293_vm4, %v1060_v31, %v1061_v30  ;;  %v295_v37 = vsel %vm293_vm4, %v1061_v30, %v1060_v31  ;;  %v979_v30 = vld [vmem:[%s1487_s3 + $0x8] sm:$0xf] }
 0x113   : > { %v422_v38 = vsel %vm1287_vm2, %v413_v34, 0.0  ;;  %v1079_v39 = vpop.permute.xlu0 %1078  ;;  %v1064_v40 = vpop.permute.xlu1 %1063  ;;  %v305_v41 = vpack.c.bf16 %v294_v36, %v294_v36  ;;  %v300_v42 = vsel %vm232_vm0, %v295_v37, 0.0  ;;  %v421_v43 = vsel %vm415_vm6, %v414_v35, 0.0  ;;  %vm681_vm0 = vmand %vm235_vm12, %vm1298_vm8 }
 0x114   : > { %v1081_v44 = vunpack.i.h.bf16 %v1079_v39  ;;  %v1080_v45 = vunpack.i.l.bf16 %v1079_v39  ;;  %v1066_v46 = vunpack.i.h.bf16 %v1064_v40  ;;  %v1065_v47 = vunpack.i.l.bf16 %v1064_v40  ;;  %v982_v39 = vld [vmem:[%s1487_s3 + $0xc] sm:$0xf]  ;;  %vm821_vm6 = vmand %vm235_vm12, %vm1287_vm2 }
 0x115   : > { %975 = vmatprep.subr.msk.bf16.mxu0 %vm310_vm5, %v305_v41  ;;  %v304_v48 = vpack.c.bf16 %v300_v42, %v300_v42  ;;  %v426_v50 = vpack.c.bf16 %v422_v38, %v422_v38  ;;  %v425_v58 = vpack.c.bf16 %v421_v43, %v421_v43  ;;  %vm748_vm3 = vcmp.lt.s32.totalorder %v1275_v20, 112 }
 0x116   : > { %v610_v49 = vsel %vm608_vm7, %v1081_v44, %v1080_v45  ;;  %v276_v51 = vsel %vm275_vm9, %v1065_v47, %v1066_v46  ;;  %v277_v52 = vsel %vm275_vm9, %v1066_v46, %v1065_v47  ;;  %v609_v18 = vsel %vm608_vm7, %v1080_v45, %v1081_v44 }
 0x117   : > { %v1324_v53 = vpop.permute.xlu0 %1088  ;;  %v1074_v54 = vpop.permute.xlu1 %1073  ;;  %v312_v55 = vsel %vm310_vm5, %v304_v48, 0  ;;  %v285_v56 = vsel %vm1298_vm8, %v276_v51, 0.0  ;;  %v284_v57 = vsel %vm278_vm11, %v277_v52, 0.0  ;;  %v616_v62 = vsel %vm1287_vm2, %v610_v49, 0.0  ;;  %v988_v49 = vld [vmem:[%s1487_s3 + $0x14] sm:$0xf] }
 0x118   : > { %v1076_v59 = vunpack.i.h.bf16 %v1074_v54  ;;  %v1075_v60 = vunpack.i.l.bf16 %v1074_v54  ;;  %318 = vmatpush1.bf16.msra.mxu0 %v312_v55  ;;  %v288_v63 = vpack.c.bf16 %v285_v56, %v285_v56  ;;  %v287_v0 = vpack.c.bf16 %v284_v57, %v284_v57  ;;  %v991_v52 = vld [vmem:[%s1487_s3 + $0x18] sm:$0xf]  ;;  %v997_v54 = vld [vmem:[%s1487_s3 + $0x20] sm:$0xf] }
 0x119   : > { %980 = vmatprep.subr.msk.bf16.mxu0 %vm310_vm5, %v426_v50  ;;  %v1091_v3 = vunpack.i.h.bf16 %v1324_v53  ;;  %v1090_v4 = vunpack.i.l.bf16 %v1324_v53  ;;  %v431_v10 = vsel %vm310_vm5, %v425_v58, 0  ;;  %v620_v27 = vpack.c.bf16 %v616_v62, %v616_v62 }
 0x11a   : > { %v484_v5 = vsel %vm483_vm13, %v1075_v60, %v1076_v59  ;;  %v485_v6 = vsel %vm483_vm13, %v1076_v59, %v1075_v60  ;;  %977 = vmatprep.subr.msk.bf16.mxu1 %vm310_vm5, %v288_v63  ;;  %v362_v9 = vsel %vm310_vm5, %v287_v0, 0  ;;  %v550_v28 = vpack.c.bf16 %v1264_v16, %v1264_v16 }
 0x11b   : > { %976 = vmatmul.mubr.msk.bf16.vlgmr.msra.gmra.mrb[0].mxu0 %vm306_vm14, %v974_v61  ;;  %v491_v7 = vsel %vm1298_vm8, %v484_v5, 0.0  ;;  %v1084_v8 = vpop.permute.xlu1 %1083  ;;  %v490_v11 = vsel %vm1303_vm10, %v485_v6, 0.0  ;;  %368 = vmatpush1.bf16.msra.mxu1 %v362_v9  ;;  %v750_v29 = vsel %vm748_vm3, %v1091_v3, %v1090_v4  ;;  %v615_v31 = vsel %vm1283_vm1, %v609_v18, 0.0 }
 0x11c   : > { %v495_v12 = vpack.c.bf16 %v491_v7, %v491_v7  ;;  %v1086_v13 = vunpack.i.h.bf16 %v1084_v8  ;;  %v1085_v14 = vunpack.i.l.bf16 %v1084_v8  ;;  %437 = vmatpush1.bf16.msra.mxu0 %v431_v10  ;;  %v494_v17 = vpack.c.bf16 %v490_v11, %v490_v11  ;;  %468 = vmatprep.mubr.bf16.mxu0 %v1161_v1 }
 0x11d   : > { %986 = vmatprep.subr.msk.bf16.mxu0 %vm310_vm5, %v551_v2  ;;  %vm817_vm4 = vcmp.lt.s32.totalorder %v1275_v20, 111  ;;  %v556_v36 = vsel %vm310_vm5, %v550_v28, 0  ;;  %v619_v37 = vpack.c.bf16 %v615_v31, %v615_v31  ;;  %v756_v38 = vsel %vm235_vm12, %v750_v29, 0.0 }
 0x11e   : > { %v679_v19 = vsel %vm677_vm15, %v1086_v13, %v1085_v14  ;;  %983 = vmatprep.subr.msk.bf16.mxu1 %vm310_vm5, %v495_v12  ;;  %v500_v22 = vsel %vm310_vm5, %v494_v17, 0  ;;  %978 = vmatmul.mubr.msk.bf16.vlgmr.msra.gmra.mrb[0].mxu1 %vm306_vm14, %v286_v15  ;;  %v678_v32 = vsel %vm677_vm15, %v1085_v14, %v1086_v13  ;;  %v760_v43 = vpack.c.bf16 %v756_v38, %v756_v38 }
 0x11f   : > { %v687_v23 = vsel %vm681_vm0, %v679_v19, 0.0  ;;  %v1094_v26 = vpop.permute.xlu1 %1093  ;;  %506 = vmatpush1.bf16.msra.mxu1 %v500_v22  ;;  %537 = vmatprep.mubr.bf16.mxu1 %v1161_v1  ;;  %v686_v40 = vsel %vm1303_vm10, %v678_v32, 0.0  ;;  %v625_v42 = vsel %vm310_vm5, %v619_v37, 0  ;;  %v749_v21 = vsel %vm748_vm3, %v1090_v4, %v1091_v3 }
 0x120   : > { %v1096_v34 = vunpack.i.h.bf16 %v1094_v26  ;;  %v1095_v35 = vunpack.i.l.bf16 %v1094_v26  ;;  %989 = vmatprep.subr.msk.bf16.mxu1 %vm310_vm5, %v620_v27  ;;  %v691_v16 = vpack.c.bf16 %v687_v23, %v687_v23  ;;  %v690_v44 = vpack.c.bf16 %v686_v40, %v686_v40 }
 0x121   : > { %v759_v48 = vpack.c.bf16 %v749_v21, %v749_v21 }
 0x122   : > { %v819_v41 = vsel %vm817_vm4, %v1096_v34, %v1095_v35  ;;  %v818_v33 = vsel %vm817_vm4, %v1095_v35, %v1096_v34  ;;  %v696_v47 = vsel %vm310_vm5, %v690_v44, 0 }
 0x123   : > { %981 = vmatmul.mubr.msk.bf16.vlgmr.msra.gmra.mrb[4].mxu0 %vm306_vm14, %v979_v30  ;;  %v827_v45 = vsel %vm821_vm6, %v819_v41, 0.0  ;;  %v826_v50 = vsel %vm1283_vm1, %v818_v33, 0.0  ;;  %v765_v20 = vsel %vm310_vm5, %v759_v48, 0 }
 0x124   : > { %562 = vmatpush1.bf16.msra.mxu0 %v556_v36  ;;  %593 = vmatprep.mubr.bf16.mxu0 %v1161_v1  ;;  %v831_v46 = vpack.c.bf16 %v827_v45, %v827_v45  ;;  %v830_v51 = vpack.c.bf16 %v826_v50, %v826_v50 }
 0x125   : > { %992 = vmatprep.subr.msk.bf16.mxu0 %vm310_vm5, %v691_v16 }
 0x126   : > { %984 = vmatmul.mubr.msk.bf16.vlgmr.msra.gmra.mrb[4].mxu1 %vm306_vm14, %v982_v39  ;;  %v836_v53 = vsel %vm310_vm5, %v830_v51, 0 }
 0x127   : > { %631 = vmatpush1.bf16.msra.mxu1 %v625_v42  ;;  %662 = vmatprep.mubr.bf16.mxu1 %v1161_v1 }
 0x128   : > { %995 = vmatprep.subr.msk.bf16.mxu1 %vm310_vm5, %v760_v43  ;;  %v887_v45 = vpop.permute.xlu0 %886 }
 0x12b   : > { %987 = vmatmul.mubr.msk.bf16.vlgmr.msra.gmra.mrb[8].mxu0 %vm306_vm14, %v985_v25 }
 0x12c   : > { %702 = vmatpush1.bf16.msra.mxu0 %v696_v47  ;;  %733 = vmatprep.mubr.bf16.mxu0 %v1161_v1 }
 0x12d   : > { %998 = vmatprep.subr.msk.bf16.mxu0 %vm310_vm5, %v831_v46 }
 0x12e   : > { %990 = vmatmul.mubr.msk.bf16.vlgmr.msra.gmra.mrb[8].mxu1 %vm306_vm14, %v988_v49 }
 0x12f   : > { %771 = vmatpush1.bf16.msra.mxu1 %v765_v20  ;;  %802 = vmatprep.mubr.bf16.mxu1 %v1161_v1 }
 0x133   : > { %993 = vmatmul.mubr.msk.bf16.vlgmr.msra.gmra.mrb[12].mxu0 %vm306_vm14, %v991_v52 }
 0x134   : > { %842 = vmatpush1.bf16.msra.mxu0 %v836_v53  ;;  %873 = vmatprep.mubr.bf16.mxu0 %v1161_v1 }
 0x136   : > { %996 = vmatmul.mubr.msk.bf16.vlgmr.msra.gmra.mrb[12].mxu1 %vm306_vm14, %v994_v24 }
 0x13b   : > { %999 = vmatmul.mubr.msk.bf16.vlgmr.msra.gmra.mrb[16].mxu0 %vm306_vm14, %v997_v54 }
 0x1ee   : > { %v351_v55 = vpop.f32.mrb[0].mxu0 }
 0x1ef   : > { %v353_v56 = vpop.f32.mrb[1].mxu0 }
 0x1f0   : > { %v355_v57 = vpop.f32.mrb[2].mxu0 }
 0x1f1   : > { %v356_v58 = vpop.f32.mrb[3].mxu0  ;;  %v401_v59 = vpop.f32.mrb[0].mxu1 }
 0x1f2   : > { %v402_v60 = vadd.f32 %v401_v59, %v351_v55  ;;  %v403_v61 = vpop.f32.mrb[1].mxu1 }
 0x1f3   : > { %v404_v62 = vadd.f32 %v403_v61, %v353_v56  ;;  %v405_v63 = vpop.f32.mrb[2].mxu1 }
 0x1f4   : > { %v406_v0 = vpop.f32.mrb[3].mxu1 }
 0x1f6   : > { %v470_v2 = vpop.f32.mrb[4].mxu0 }
 0x1f7   : > { %v477_v1 = vadd.f32 %v470_v2, %v402_v60  ;;  %v472_v3 = vpop.f32.mrb[5].mxu0 }
 0x1f8   : > { %v478_v4 = vadd.f32 %v472_v3, %v404_v62  ;;  %v474_v5 = vpop.f32.mrb[6].mxu0 }
 0x1f9   : > { %v475_v6 = vpop.f32.mrb[7].mxu0  ;;  %v539_v7 = vpop.f32.mrb[4].mxu1 }
 0x1fa   : > { %v546_v8 = vadd.f32 %v539_v7, %v477_v1  ;;  %v541_v9 = vpop.f32.mrb[5].mxu1 }
 0x1fb   : > { %v547_v10 = vadd.f32 %v541_v9, %v478_v4  ;;  %v543_v11 = vpop.f32.mrb[6].mxu1 }
 0x1fc   : > { %v544_v12 = vpop.f32.mrb[7].mxu1 }
 0x1fe   : > { %v595_v13 = vpop.f32.mrb[8].mxu0 }
 0x1ff   : > { %v602_v14 = vadd.f32 %v595_v13, %v546_v8  ;;  %v597_v15 = vpop.f32.mrb[9].mxu0 }
 0x200   : > { %v603_v17 = vadd.f32 %v597_v15, %v547_v10  ;;  %v599_v18 = vpop.f32.mrb[10].mxu0 }
 0x201   : > { %v600_v19 = vpop.f32.mrb[11].mxu0  ;;  %v664_v22 = vpop.f32.mrb[8].mxu1 }
 0x202   : > { %v671_v23 = vadd.f32 %v664_v22, %v602_v14  ;;  %v666_v26 = vpop.f32.mrb[9].mxu1 }
 0x203   : > { %v672_v27 = vadd.f32 %v666_v26, %v603_v17  ;;  %v668_v28 = vpop.f32.mrb[10].mxu1 }
 0x204   : > { %v669_v29 = vpop.f32.mrb[11].mxu1 }
 0x206   : > { %v735_v30 = vpop.f32.mrb[12].mxu0 }
 0x207   : > { %v742_v31 = vadd.f32 %v735_v30, %v671_v23  ;;  %v737_v32 = vpop.f32.mrb[13].mxu0 }
 0x208   : > { %v743_v34 = vadd.f32 %v737_v32, %v672_v27  ;;  %v739_v35 = vpop.f32.mrb[14].mxu0 }
 0x209   : > { %v740_v16 = vpop.f32.mrb[15].mxu0  ;;  %v804_v36 = vpop.f32.mrb[12].mxu1 }
 0x20a   : > { %v811_v37 = vadd.f32 %v804_v36, %v742_v31  ;;  %v806_v38 = vpop.f32.mrb[13].mxu1 }
 0x20b   : > { %v812_v39 = vadd.f32 %v806_v38, %v743_v34  ;;  %v808_v40 = vpop.f32.mrb[14].mxu1 }
 0x20c   : > { %v809_v41 = vpop.f32.mrb[15].mxu1 }
 0x20e   : > { %v875_v42 = vpop.f32.mrb[16].mxu0 }
 0x20f   : > { %v882_v43 = vadd.f32 %v875_v42, %v811_v37  ;;  %v877_v44 = vpop.f32.mrb[17].mxu0 }
 0x210   : > { %v883_v25 = vadd.f32 %v877_v44, %v812_v39  ;;  %v879_v21 = vpop.f32.mrb[18].mxu0 }
 0x211   : > { %v889_v33 = vadd.f32 %v887_v45, %v882_v43  ;;  %v880_v46 = vpop.f32.mrb[19].mxu0 }
 0x212   : > { %v890_v47 = vadd.f32 %v887_v45, %v883_v25 }
 0x213   : > { %891 = vst [vmem:[%s217_s13] sm:$0xff] %v889_v33 }
 0x214   : > { %892 = vst [vmem:[%s217_s13 + $0x8] sm:$0xff] %v890_v47 }
 0x215   : > { %1110 = shalt.err (!%p1107_p3)
}
 0x216   : > { %s1111_s6 = scalar_lea.hbm %s1442_s17, 256  ;;  %s1115_s9 = scalar_lea.hbm %s1489_s5, 512 }
 0x217   : > { %p1112_p4 = scmp.ne.s32.totalorder %s1442_s17, %s1111_s6  ;;  %p1116_p9 = scmp.lt.u32.totalorder %s1442_s17, %s1489_s5 }
 0x218   : > { %p1117_p10 = scmp.lt.u32.totalorder %s1115_s9, %s1111_s6  ;;  %p1119_p12 = scmp.lt.u32.totalorder %s1111_s6, %s1442_s17 }
 0x219   : > { %p1113_p7 = pnand %p1112_p4, %p1240_p5 }
 0x21a   : > { %p1118_p11 = por %p1117_p10, %p1116_p9 }
 0x21b   : > { %p1114_p8 = pneg %p1113_p7 }
 0x21c   : > { %p1120_p13 = por %p1119_p12, %p1118_p11 }
 0x21e   : > { %p1121_p0 = pnand %p1120_p13, %p1114_p8 }
 0x220   : > { %1124 = shalt.err (!%p1121_p0)
}
 0x221   : > { %1007 = dma.vmem_to_hbm [thread:$0]  (%p1240_p5), %s1444_s14, 256, %s1442_s17, %s894_s22  }
 0x222 PF: > { %p1013_p1 = scmp.ge.s32.totalorder %s1159_s21, 2  ;;  %s920_s12 = sand.u32 1, %s1147_s18  }
 0x223   : > { %s921_s13 = scalar_lea.sflag [#allocation3], %s920_s12 }
 0x224   : > { %p1010_p2 = pnand %p1013_p1, %p1244_p6 }
 0x226   : > { %1142 = dma.done.wait (!%p1010_p2), %s921_s13, 256  }
 0x227   : > { %1144 = vsyncadd (!%p1010_p2), %s921_s13, 4294967040  ;;  %p15_p3 = scmp.ge.s32.totalorder %s1227_s24, 4   ;;  %s1500_s18 = smov %s1151_s19 }
 0x228   : > { %s1501_s19 = smov %s1155_s20  ;;  %s1502_s20 = smov %s1238_s27 }
 0x229   : > { %s1503_s21 = smov %s1227_s24  ;;  %17 = sbr.rel (!%p15_p3) target bundleno = 3 (0x3), region = 83 }
 0x230   :  { %926 = vsyncpa [#allocation3], 1 }
 0x231   :  { %928 = vsyncpa [#allocation3 + $0x1], 1 }

</bundles_post_ra>
